<compile_context>
chip_gen: v6e
topology: v6e:2x2x1
jax: 0.10.0
libtpu: 0.0.40
codegen_flags: <defaults>
</compile_context>

<pallas_src>
import functools
import math

import jax
import jax.numpy as jnp
import numpy as np
from jax import lax
from jax.experimental import pallas as pl
from jax.experimental.pallas import tpu as pltpu


# --------------------------------------------------------------------------- #
# Kernels
# --------------------------------------------------------------------------- #
def _patch_sum(x_ref, rfold_ref, cfold_ref, *, c_tile, total_rows, ragged):
    """Sum over c_tile channels and fold k x k patches.

    x_ref:     (c_tile, rows_k, W)   input slab (VMEM)
    rfold_ref: (rows_tile, rows_k)   0/1 row-fold matrix (VMEM resident)
    cfold_ref: (W, Wo)               0/1 column-fold matrix (VMEM resident)
    returns    (rows_tile, Wo)       f32 patch sums
    """
    rows_k = x_ref.shape[1]

    # Channel reduce: plain VPU adds on the full slab (hidden under the DMA).
    csum = x_ref[0].astype(jnp.float32)
    for c in range(1, c_tile):
        csum = csum + x_ref[c].astype(jnp.float32)

    if ragged:
        # Last row-tile may extend past H; zero the padded rows so stale VMEM
        # contents (possibly NaN) cannot reach valid patches via the matmul.
        valid = total_rows - pl.program_id(1) * rows_k
        row_idx = lax.broadcasted_iota(jnp.int32, csum.shape, 0)
        csum = jnp.where(row_idx < valid, csum, 0.0)

    # Row fold then column fold on the MXU (idle in this HBM-bound kernel).
    folded_rows = jnp.dot(rfold_ref[...], csum, preferred_element_type=jnp.float32)
    return jnp.dot(folded_rows, cfold_ref[...], preferred_element_type=jnp.float32)


def _mean_filter_kernel_cfused(x_ref, rfold_ref, cfold_ref, o_ref, *,
                               scale, c_tile, total_rows, ragged):
    """All channels in the block: one grid step per (batch, row-tile)."""
    psum = _patch_sum(x_ref, rfold_ref, cfold_ref,
                      c_tile=c_tile, total_rows=total_rows, ragged=ragged)
    o_ref[...] = (psum * scale).astype(o_ref.dtype)


def _mean_filter_kernel_cgrid(x_ref, rfold_ref, cfold_ref, o_ref, acc_ref, *,
                              scale, c_tile, total_rows, ragged):
    """Large-C fallback: channels as the innermost 'arbitrary' grid axis."""
    ci = pl.program_id(2)

    @pl.when(ci == 0)
    def _init():
        acc_ref[...] = jnp.zeros_like(acc_ref)

    acc_ref[...] += _patch_sum(x_ref, rfold_ref, cfold_ref,
                               c_tile=c_tile, total_rows=total_rows, ragged=ragged)

    @pl.when(ci == pl.num_programs(2) - 1)
    def _finalize():
        o_ref[...] = (acc_ref[...] * scale).astype(o_ref.dtype)


# --------------------------------------------------------------------------- #
# Tiling heuristics
# --------------------------------------------------------------------------- #
def _vmem_limit_bytes():
    """Generation-aware scoped-VMEM limit (<= ~48 MiB; safe on v7x's 64 MiB)."""
    try:
        cap = int(pltpu.get_tpu_info().vmem_capacity_bytes)
    except Exception:  # noqa: BLE001 - fall back to the smallest generation
        cap = 64 * 1024 * 1024
    return max(16 * 1024 * 1024, min(48 * 1024 * 1024, (cap * 3) // 4))


def _row_quantum(k, itemsize):
    """Output-row granularity keeping both blocks sublane-pack aligned."""
    sub = 8 * max(1, 4 // max(1, itemsize))        # 8 (f32) / 16 (bf16) / 32 (i8)
    need_in = sub // math.gcd(sub, k)              # rows_tile*k % sub == 0
    return (8 * need_in) // math.gcd(8, need_in)   # lcm(8, need_in)


def _pick_channel_tile(c, k, w, itemsize, target_bytes):
    """Channels per block: all of them for small C, else a divisor that fits."""
    q = _row_quantum(k, itemsize)
    if c <= 8 or c * q * k * w * itemsize <= target_bytes:
        return c
    best = 1
    for d in range(1, c + 1):
        if c % d == 0 and d * q * k * w * itemsize <= target_bytes:
            best = d
    return best


def _pick_rows_tile(h_out, k, w, c_tile, itemsize, batch, target_bytes):
    """Output rows per block -> (rows_tile, n_row_tiles, ragged)."""
    q = _row_quantum(k, itemsize)
    bytes_per_out_row = max(1, c_tile * k * w * itemsize)
    max_rows = max(1, target_bytes // bytes_per_out_row)

    if max_rows >= h_out:
        rows_tile, n_tiles = h_out, 1
        # v7x megacore: with batch == 1 a single tile leaves one core idle.
        if batch == 1 and h_out >= 2 * q and h_out % 2 == 0 and (h_out // 2) % q == 0:
            rows_tile, n_tiles = h_out // 2, 2
        return rows_tile, n_tiles, False

    rt = (max_rows // q) * q
    if rt >= q:
        cand = rt                              # prefer an exact divisor (no ragged edge)
        while cand >= q and h_out % cand:
            cand -= q
        if cand >= q:
            return cand, h_out // cand, False
        return rt, -(-h_out // rt), True       # capped tile + masked ragged edge
    rt = min(q, h_out)                         # budget below one quantum: minimum legal tile
    return rt, -(-h_out // rt), (h_out % rt != 0)


# --------------------------------------------------------------------------- #
# Module
# --------------------------------------------------------------------------- #
class MeanFilter:
    """JAX/Pallas port of the PyTorch MeanFilter module (forward only)."""

    def __init__(self, kernel_size: int, in_channels: int):
        self.kernel_size = kernel_size
        self.stride = kernel_size
        self.in_channels = in_channels
        self.mean_value = 1.0 / (kernel_size * kernel_size * in_channels)
        # Non-trainable all-ones conv weight, kept for parity with the PyTorch
        # module; the kernel folds it into the sum.
        self.weight = jnp.full(
            (1, in_channels, kernel_size, kernel_size), 1.0, dtype=jnp.float32
        )

    def __call__(self, x: jax.Array) -> jax.Array:
        B, C, H, W = x.shape
        k = self.kernel_size
        if C != self.in_channels:
            raise ValueError(f"Expected {self.in_channels} input channels, got {C}")
        if H % k != 0 or W % k != 0:
            raise ValueError(
                f"Input dimensions (height={H}, width={W}) must be divisible by "
                f"kernel_size={k}"
            )

        Ho, Wo = H // k, W // k
        itemsize = jnp.dtype(x.dtype).itemsize

        vmem_limit = _vmem_limit_bytes()
        target_block_bytes = min(8 * 1024 * 1024, max(1 * 1024 * 1024, vmem_limit // 6))

        c_tile = _pick_channel_tile(C, k, W, itemsize, target_block_bytes)
        n_c = C // c_tile
        rows_tile, n_rows, ragged = _pick_rows_tile(
            Ho, k, W, c_tile, itemsize, B, target_block_bytes
        )
        rows_k = rows_tile * k

        # 0/1 fold matrices; index_maps pin them to block (0, 0) -> VMEM resident.
        rfold = (jnp.arange(rows_k)[None, :] // k
                 == jnp.arange(rows_tile)[:, None]).astype(jnp.float32)
        cfold = (jnp.arange(W)[:, None] // k
                 == jnp.arange(Wo)[None, :]).astype(jnp.float32)

        cost = pl.CostEstimate(
            flops=2 * B * C * H * W + 2 * B * Ho * W * Wo,
            transcendentals=0,
            bytes_accessed=B * C * H * W * itemsize + B * Ho * Wo * itemsize,
        )

        kernel_kwargs = dict(scale=self.mean_value, c_tile=c_tile,
                             total_rows=H, ragged=ragged)

        if n_c == 1:
            kernel = functools.partial(_mean_filter_kernel_cfused, **kernel_kwargs)
            grid = (B, n_rows)
            in_specs = [
                pl.BlockSpec((None, C, rows_k, W), lambda b, r: (b, 0, r, 0)),
                pl.BlockSpec((rows_tile, rows_k), lambda b, r: (0, 0)),
                pl.BlockSpec((W, Wo), lambda b, r: (0, 0)),
            ]
            out_specs = pl.BlockSpec((None, rows_tile, Wo), lambda b, r: (b, r, 0))
            scratch_shapes = []
            semantics = ("parallel", "parallel")
        else:
            kernel = functools.partial(_mean_filter_kernel_cgrid, **kernel_kwargs)
            grid = (B, n_rows, n_c)
            in_specs = [
                pl.BlockSpec((None, c_tile, rows_k, W), lambda b, r, c: (b, c, r, 0)),
                pl.BlockSpec((rows_tile, rows_k), lambda b, r, c: (0, 0)),
                pl.BlockSpec((W, Wo), lambda b, r, c: (0, 0)),
            ]
            out_specs = pl.BlockSpec((None, rows_tile, Wo), lambda b, r, c: (b, r, 0))
            scratch_shapes = [pltpu.VMEM((rows_tile, Wo), jnp.float32)]
            semantics = ("parallel", "parallel", "arbitrary")

        out = pl.pallas_call(
            kernel,
            out_shape=jax.ShapeDtypeStruct((B, Ho, Wo), x.dtype),
            grid_spec=pltpu.PrefetchScalarGridSpec(
                num_scalar_prefetch=0,
                grid=grid,
                in_specs=in_specs,
                out_specs=out_specs,
                scratch_shapes=scratch_shapes,
            ),
            compiler_params=pltpu.CompilerParams(
                dimension_semantics=semantics,
                vmem_limit_bytes=vmem_limit,
            ),
            cost_estimate=cost,
        )(x, rfold, cfold)

        # (B, Ho, Wo) -> (B, 1, Ho, Wo): conv2d has a single output channel.
        return out.reshape(B, 1, Ho, Wo)


# --------------------------------------------------------------------------- #
# Reference + self-test
# --------------------------------------------------------------------------- #
def _reference(x: jax.Array, kernel_size: int) -> jax.Array:
    """Pure-JAX reference matching F.conv2d(ones, stride=k) * mean_value."""
    B, C, H, W = x.shape
    k = kernel_size
    Ho, Wo = H // k, W // k
    xr = x.reshape(B, C, Ho, k, Wo, k)
    s = jnp.sum(xr.astype(jnp.float32), axis=(1, 3, 5))
    return (s / (k * k * C)).reshape(B, 1, Ho, Wo).astype(x.dtype)


if __name__ == "__main__":
    key = jax.random.PRNGKey(0)
    B, C, H, W = 2, 4, 16, 16
    kernel_size = 2

    x = jax.random.normal(key, (B, C, H, W), dtype=jnp.float32)

    mf = MeanFilter(kernel_size=kernel_size, in_channels=C)
    out = jax.block_until_ready(mf(x))

    ref = _reference(x, kernel_size)
    assert out.shape == (B, 1, H // kernel_size, W // kernel_size), out.shape
    assert out.dtype == x.dtype, out.dtype
    np.testing.assert_allclose(np.asarray(out), np.asarray(ref), rtol=1e-5, atol=1e-5)

    print("KERNEL_OK")
</pallas_src>

<mosaic_0001>
module attributes {stable_mosaic.version = 11 : i64} {
  func.func @_mean_filter_kernel_cfused(%arg0: i32, %arg1: i32, %arg2: memref<1x4x16x16xf32, #tpu.memory_space<vmem>>, %arg3: memref<8x16xf32, #tpu.memory_space<vmem>>, %arg4: memref<16x8xf32, #tpu.memory_space<vmem>>, %arg5: memref<1x8x8xf32, #tpu.memory_space<vmem>>) attributes {dimension_semantics = [#tpu.dimension_semantics<parallel>, #tpu.dimension_semantics<parallel>], iteration_bounds = array<i64: 2, 1>, scalar_prefetch = 0 : i64, scratch_operands = 0 : i64, tpu.core_type = #tpu.core_type<tc>, window_params = [{transform_indices = @transform_0, window_bounds = array<i64: 1, 4, 16, 16>}, {pipeline_mode = #tpu.pipeline_mode<synchronous>, transform_indices = @transform_1, window_bounds = array<i64: 8, 16>}, {pipeline_mode = #tpu.pipeline_mode<synchronous>, transform_indices = @transform_2, window_bounds = array<i64: 16, 8>}, {transform_indices = @transform_3, window_bounds = array<i64: 1, 8, 8>}]} {
    %c0 = arith.constant 0 : index
    %c0_0 = arith.constant 0 : index
    %c0_1 = arith.constant 0 : index
    %c0_2 = arith.constant 0 : index
    %0 = vector.load %arg2[%c0, %c0_0, %c0_1, %c0_2] : memref<1x4x16x16xf32, #tpu.memory_space<vmem>>, vector<1x1x16x16xf32>
    %1 = vector.shape_cast %0 : vector<1x1x16x16xf32> to vector<16x16xf32>
    %c0_3 = arith.constant 0 : index
    %c1 = arith.constant 1 : index
    %c0_4 = arith.constant 0 : index
    %c0_5 = arith.constant 0 : index
    %2 = vector.load %arg2[%c0_3, %c1, %c0_4, %c0_5] : memref<1x4x16x16xf32, #tpu.memory_space<vmem>>, vector<1x1x16x16xf32>
    %3 = vector.shape_cast %2 : vector<1x1x16x16xf32> to vector<16x16xf32>
    %4 = arith.addf %1, %3 : vector<16x16xf32>
    %c0_6 = arith.constant 0 : index
    %c2 = arith.constant 2 : index
    %c0_7 = arith.constant 0 : index
    %c0_8 = arith.constant 0 : index
    %5 = vector.load %arg2[%c0_6, %c2, %c0_7, %c0_8] : memref<1x4x16x16xf32, #tpu.memory_space<vmem>>, vector<1x1x16x16xf32>
    %6 = vector.shape_cast %5 : vector<1x1x16x16xf32> to vector<16x16xf32>
    %7 = arith.addf %4, %6 : vector<16x16xf32>
    %c0_9 = arith.constant 0 : index
    %c3 = arith.constant 3 : index
    %c0_10 = arith.constant 0 : index
    %c0_11 = arith.constant 0 : index
    %8 = vector.load %arg2[%c0_9, %c3, %c0_10, %c0_11] : memref<1x4x16x16xf32, #tpu.memory_space<vmem>>, vector<1x1x16x16xf32>
    %9 = vector.shape_cast %8 : vector<1x1x16x16xf32> to vector<16x16xf32>
    %10 = arith.addf %7, %9 : vector<16x16xf32>
    %c0_12 = arith.constant 0 : index
    %c0_13 = arith.constant 0 : index
    %11 = vector.load %arg3[%c0_12, %c0_13] : memref<8x16xf32, #tpu.memory_space<vmem>>, vector<8x16xf32>
    %cst = arith.constant dense<0.000000e+00> : vector<8x16xf32>
    %12 = tpu.matmul %11, %10, %cst {dimension_numbers = #tpu.dot_dimension_numbers<[1], [0], [0], [1], [0, 0, 1, 1], [], []>} : vector<8x16xf32>, vector<16x16xf32>, vector<8x16xf32> -> vector<8x16xf32>
    %c0_14 = arith.constant 0 : index
    %c0_15 = arith.constant 0 : index
    %13 = vector.load %arg4[%c0_14, %c0_15] : memref<16x8xf32, #tpu.memory_space<vmem>>, vector<16x8xf32>
    %cst_16 = arith.constant dense<0.000000e+00> : vector<8x8xf32>
    %14 = tpu.matmul %12, %13, %cst_16 {dimension_numbers = #tpu.dot_dimension_numbers<[1], [0], [0], [1], [0, 0, 1, 1], [], []>} : vector<8x16xf32>, vector<16x8xf32>, vector<8x8xf32> -> vector<8x8xf32>
    %cst_17 = arith.constant 6.250000e-02 : f32
    %15 = vector.broadcast %cst_17 : f32 to vector<8x8xf32>
    %16 = arith.mulf %14, %15 : vector<8x8xf32>
    %c0_18 = arith.constant 0 : index
    %c0_19 = arith.constant 0 : index
    %c0_20 = arith.constant 0 : index
    %17 = vector.load %arg5[%c0_18, %c0_19, %c0_20] : memref<1x8x8xf32, #tpu.memory_space<vmem>>, vector<1x8x8xf32>
    %18 = vector.shape_cast %17 : vector<1x8x8xf32> to vector<8x8xf32>
    %19 = vector.shape_cast %16 : vector<8x8xf32> to vector<1x8x8xf32>
    tpu.vector_store %arg5[%c0_18, %c0_19, %c0_20], %19 {strides = array<i32>} : memref<1x8x8xf32, #tpu.memory_space<vmem>>, vector<1x8x8xf32>,
    return
  }
  func.func @transform_0(%arg0: i32, %arg1: i32) -> (i32, i32, i32, i32) {
    %c0_i32 = arith.constant 0 : i32
    %c0_i32_0 = arith.constant 0 : i32
    %c0_i32_1 = arith.constant 0 : i32
    return %arg0, %c0_i32, %arg1, %c0_i32_0 : i32, i32, i32, i32
  }
  func.func @transform_1(%arg0: i32, %arg1: i32) -> (i32, i32) {
    %c0_i32 = arith.constant 0 : i32
    %c0_i32_0 = arith.constant 0 : i32
    %c0_i32_1 = arith.constant 0 : i32
    return %c0_i32, %c0_i32_0 : i32, i32
  }
  func.func @transform_2(%arg0: i32, %arg1: i32) -> (i32, i32) {
    %c0_i32 = arith.constant 0 : i32
    %c0_i32_0 = arith.constant 0 : i32
    %c0_i32_1 = arith.constant 0 : i32
    return %c0_i32, %c0_i32_0 : i32, i32
  }
  func.func @transform_3(%arg0: i32, %arg1: i32) -> (i32, i32, i32) {
    %c0_i32 = arith.constant 0 : i32
    %c0_i32_0 = arith.constant 0 : i32
    return %arg0, %arg1, %c0_i32 : i32, i32, i32
  }
}

</mosaic_0001>

<bundles_post_ra>
// kernel: tpu_custom_call.1
= control target key start
LH: loop header
LB: loop body
LE: loop exit
PB: predicated region body
PF: predicated region fallthrough
CT: control target
= control target key end

     0   :  { %8 = vsyncpa [#allocation3], 0  ;;  %s868_s0 = inlined_call_operand.hbm [shape: f32[2,4,16,16], index: 0, kind: input, shape index: {}]   ;;  %s869_s1 = inlined_call_operand.vmem [shape: f32[8,16], index: 1, kind: input, shape index: {}]   ;;  %s870_s2 = inlined_call_operand.vmem [shape: f32[16,8], index: 2, kind: input, shape index: {}]   ;;  %s871_s3 = inlined_call_operand.hbm [shape: f32[2,8,8], index: 3, kind: output, shape index: {}]  }
   0x1   :  { %10 = vsyncpa [#allocation3 + $0x1], 0 }
   0x2   :  { %11 = vsyncpa [#allocation4], 0 }
   0x3   :  { %13 = vsyncpa [#allocation4 + $0x1], 0  ;;  %s720_s12 = smov 0   ;;  %s722_s13 = smov 0  }
   0x4   :  { %s724_s14 = smov 0   ;;  %s726_s15 = smov 0  }
   0x5   :  { %s728_s16 = smov 0   ;;  %s730_s17 = smov 0  }
   0x6 LB: > { %s475_s18 = sadd.s32 4294967295, %s692_s17   ;;  %s476_s19 = sadd.s32 4294967294, %s692_s17   ;;  %s692_s17 = sphi %s730_s17, %s19_s17   ;;  %s688_s16 = sphi %s728_s16, %s882_s16   ;;  %s684_s15 = sphi %s726_s15, %s881_s15   ;;  %s680_s14 = sphi %s724_s14, %s880_s14   ;;  %s676_s13 = sphi %s722_s13, %s879_s13   ;;  %s672_s12 = sphi %s720_s12, %s878_s12  }
   0x7   : > { %s31_s20 = sadd.s32 1, %s688_s16  ;;  %s40_s21 = sadd.s32 1, %s680_s14 }
   0x8   : > { %p33_p0 = scmp.ge.s32.totalorder %s31_s20, 2  ;;  %p47_p1 = scmp.ne.s32.totalorder %s680_s14, %s676_s13 }
   0x9   : > { %p48_p2 = scmp.eq.s32.totalorder %s692_s17, 0  ;;  %p53_p3 = scmp.ne.s32.totalorder %s676_s13, %s672_s12 }
   0xa   : > { %s884_s20 = smov (%p33_p0, %s31_s20), 0  ;;  %p54_p5 = scmp.eq.s32.totalorder %s475_s18, 0 }
   0xb   : > { %p761_p4 = por %p48_p2, %p47_p1  ;;  %s35_s23 = ssub.s32 %s688_s16, %s884_s20 }
   0xc   : > { %p121_p6 = scmp.eq.s32.totalorder %s475_s18, 1  ;;  %p38_p7 = scmp.eq.s32.totalorder %s35_s23, 0 }
   0xd   : > { %p767_p8 = por %p54_p5, %p53_p3  ;;  %p127_p10 = scmp.eq.s32.totalorder %s476_s19, 1 }
   0xe   : > { %p771_p9 = por %p121_p6, %p47_p1  ;;  %p530_p13 = scmp.lt.s32.totalorder %s692_s17, 2 }
   0xf   : > { %s776_s26 = scalar_select %p38_p7, %s680_s14, %s40_s21  }
  0x10   : > { %p778_p11 = por %p127_p10, %p53_p3  ;;  %s153_s28 = sand.u32 1, %s680_s14  }
  0x11   : > { %s479_s29 = sshll.u32 %s153_s28, 6  ;;  %s497_s30 = sshll.u32 %s688_s16, 10 }
  0x12   : > { %s165_s6 = scalar_lea.hbm %s868_s0, %s497_s30  ;;  %s157_s7 = scalar_lea.vmem [#allocation2], %s479_s29 }
  0x13   : > { %s166_s8 = sshll.u32 %s157_s7, 4  ;;  %p791_p0 = pnand %p530_p13, %p761_p4  ;;  %s167_s8 = int_to_ptr.vmem [resolvable:$true] %s166_s8 }
  0x14   : > { %p482_p1 = scmp.ge.s32.totalorder %s692_s17, 1  ;;  %s154_s10 = scalar_lea.sflag [#allocation3], %s153_s28 }
  0x15   : > { %p586_p2 = pneg %p791_p0  ;;  %s597_s11 = scalar_lea.vmem %s167_s8, 1024 }
  0x16   : > { %p598_p3 = scmp.ne.s32.totalorder %s167_s8, %s597_s11  ;;  %s694_s18 = smov [#allocation2]  }
  0x17   : > { %s602_s19 = sshll.u32 %s694_s18, 4  ;;  %s603_s19 = int_to_ptr.vmem [resolvable:$false] %s602_s19 }
  0x18   : > { %p600_p5 = pnand %p598_p3, %p586_p2  ;;  %s604_s21 = scalar_lea.vmem %s603_s19, 2048 }
  0x19   : > { %p605_p7 = scmp.lt.s32.totalorder %s167_s8, %s603_s19  ;;  %p606_p10 = scmp.lt.s32.totalorder %s604_s21, %s597_s11 }
  0x1a   : > { %p601_p6 = pneg %p600_p5 }
  0x1b   : > { %p607_p12 = por %p606_p10, %p605_p7 }
  0x1d   : > { %p608_p4 = pnand %p607_p12, %p601_p6 }
  0x1f   : > { %611 = shalt.err (!%p608_p4)
}
  0x20   : > { %s695_s22 = smov 128   ;;  %s696_s23 = smov 8  }
  0x21   : > { %525 = dma.hbm_to_vmem [thread:$0]  (!%p791_p0), %s165_s6, 1024, %s167_s8, %s154_s10, %s695_s22, %s695_s22, %s696_s23  }
  0x22   : > { %p174_p13 = scmp.lt.s32.totalorder %s692_s17, 3 }
  0x24   : > { %p175_p2 = pnand %p482_p1, %p174_p13 }
  0x25   : > { %s804_s28 = sand.u32 (!%p175_p2), 1, %s676_s13  }
  0x26   : > { %178 = sbr.rel (%p175_p2) target bundleno = 455 (0x1c7), region = 32  ;;  %s483_s29 = sshll.u32 (!%p175_p2), %s804_s28, 6 }
  0x27   : > { %s181_s30 = scalar_lea.sflag (!%p175_p2), [#allocation3], %s804_s28  ;;  %s184_s4 = scalar_lea.vmem (!%p175_p2), [#allocation2], %s483_s29 }
  0x2b   : > { %663 = dma.done.wait (%p767_p8), %s181_s30, 1024  }
  0x2c   : > { %665 = vsyncadd (%p767_p8), %s181_s30, 4294966272  ;;  %v697_v0 = vmov 0.0   ;;  %vm698_vm0 = vmmov 0   ;;  %v209_v1 = vld [vmem:[%s184_s4 + $0x8] sm:$0xff]  ;;  %v486_v2 = vld [vmem:[%s184_s4 + $0x18] sm:$0xff]  ;;  %vm226_vm1 = vcmask 130048  }
  0x2d   : > { %504 = vmatprep.subr.mxu0 %v697_v0  ;;  %508 = vmatprep.mubr.msk.f32.mxu0 %vm698_vm0, %v697_v0  ;;  %v488_v3 = vld [vmem:[%s184_s4 + $0x28] sm:$0xff]  ;;  %v214_v4 = vadd.f32 %v486_v2, %v209_v1  ;;  %v208_v5 = vld [vmem:[%s184_s4] sm:$0xff]  ;;  %v485_v6 = vld [vmem:[%s184_s4 + $0x10] sm:$0xff]  ;;  %s484_s10 = sshll.u32 %s804_s28, 3  ;;  %s494_s11 = sshll.u32 %s684_s15, 7  ;;  %vm376_vm2 = vcmask 64512  }
  0x2e   : > { %511 = vmatprep.subr.mxu1 %v697_v0  ;;  %515 = vmatprep.mubr.msk.f32.mxu1 %vm698_vm0, %v697_v0  ;;  %v490_v7 = vld [vmem:[%s184_s4 + $0x38] sm:$0xff]  ;;  %v213_v8 = vadd.f32 %v485_v6, %v208_v5  ;;  %v487_v9 = vld [vmem:[%s184_s4 + $0x20] sm:$0xff]  ;;  %v489_v11 = vld [vmem:[%s184_s4 + $0x30] sm:$0xff]  ;;  %s206_s18 = scalar_lea.vmem [#allocation5], %s484_s10  ;;  %s826_s23 = scalar_lea.hbm %s871_s3, %s494_s11 }
  0x2f   : > { %v219_v10 = vadd.f32 %v488_v3, %v214_v4  ;;  %v301_v12 = vld [vmem:[%s870_s2 + $0x8] sm:$0xff]  ;;  %v225_v16 = vld [vmem:[%s869_s1] sm:$0xff]  ;;  %s393_s19 = sshll.u32 %s206_s18, 4  ;;  %s379_s29 = scalar_lea.sflag [#allocation4], %s804_s28  ;;  %s394_s19 = int_to_ptr.vmem [resolvable:$true] %s393_s19 }
  0x30   : > { %v218_v13 = vadd.f32 %v487_v9, %v213_v8  ;;  %512 = vmatpush3.msra.mxu1 %v301_v12  ;;  %v300_v17 = vld [vmem:[%s870_s2] sm:$0xff]  ;;  %s612_s30 = scalar_lea.vmem %s394_s19, 128  ;;  %s699_s15 = smov [#allocation5]  }
  0x31   : > { %v224_v14 = vadd.f32 %v490_v7, %v219_v10  ;;  %513 = vmatprep.subr.mxu1 %v697_v0  ;;  %p613_p8 = scmp.ne.s32.totalorder %s394_s19, %s612_s30  ;;  %s616_s4 = sshll.u32 %s699_s15, 4  ;;  %s617_s4 = int_to_ptr.vmem [resolvable:$false] %s616_s4 }
  0x32   : > { %v223_v15 = vadd.f32 %v489_v11, %v218_v13  ;;  %514 = vmatpush3.msra.mxu1 %v300_v17  ;;  %s618_s5 = scalar_lea.vmem %s617_s4, 256  ;;  %p619_p1 = scmp.lt.s32.totalorder %s394_s19, %s617_s4 }
  0x33   : > { %505 = vmatpush3.msra.mxu0 %v224_v14  ;;  %p614_p12 = pnand %p613_p8, %p771_p9  ;;  %p620_p3 = scmp.lt.s32.totalorder %s618_s5, %s612_s30 }
  0x34   : > { %506 = vmatprep.subr.mxu0 %v697_v0 }
  0x35   : > { %507 = vmatpush3.msra.mxu0 %v223_v15  ;;  %p615_p0 = pneg %p614_p12  ;;  %p621_p5 = por %p620_p3, %p619_p1 }
  0x36   : > { %509 = vmatmul.mubr.msk.f32.vlgmr.msra.gmra.mxu0 %vm226_vm1, %v225_v16 }
  0x37   : > { %p622_p6 = pnand %p621_p5, %p615_p0 }
  0xf6   : > { %v296_v18 = vpop.f32.mrf.mxu0 }
  0xf7   : > { %516 = vmatmul.mubr.msk.f32.vlgmr.msra.gmra.mxu1 %vm226_vm1, %v296_v18 }
  0xf8   : > { %v510_v19 = vpop.f32.mrf.mxu0 }
 0x1b7   : > { %v371_v20 = vpop.f32.mrf.mxu1 }
 0x1b8   : > { %v375_v21 = vmul.f32 0.0625, %v371_v20 }
 0x1b9   : > { %v517_v22 = vpop.f32.mrf.mxu1 }
 0x1ba   : > { %377 = vst.msk [vmem:[%s206_s18] sm:$0xff] %vm376_vm2, %v375_v21 }
 0x1bb   : > { %625 = shalt.err (!%p622_p6)
}
 0x1bc   : > { %s626_s24 = scalar_lea.hbm %s826_s23, 128  ;;  %s630_s7 = scalar_lea.hbm %s871_s3, 256 }
 0x1bd   : > { %p627_p7 = scmp.ne.s32.totalorder %s826_s23, %s626_s24  ;;  %p631_p13 = scmp.lt.s32.totalorder %s826_s23, %s871_s3 }
 0x1be   : > { %p632_p2 = scmp.lt.s32.totalorder %s630_s7, %s626_s24 }
 0x1bf   : > { %p628_p10 = pnand %p627_p7, %p771_p9 }
 0x1c0   : > { %p633_p8 = por %p632_p2, %p631_p13 }
 0x1c1   : > { %p629_p4 = pneg %p628_p10 }
 0x1c3   : > { %p634_p12 = pnand %p633_p8, %p629_p4 }
 0x1c5   : > { %637 = shalt.err (!%p634_p12)
}
 0x1c6   : > { %520 = dma.vmem_to_hbm [thread:$0]  (%p771_p9), %s394_s19, 128, %s826_s23, %s379_s29  }
 0x1c7 PF: > { %s405_s10 = sand.u32 1, %s672_s12   ;;  %p877_p0 = scmp.ge.s32.totalorder %s692_s17, 2 }
 0x1c8   : > { %s406_s11 = scalar_lea.sflag [#allocation4], %s405_s10 }
 0x1c9   : > { %p527_p1 = pnand %p877_p0, %p778_p11 }
 0x1cb   : > { %p528_p3 = pneg %p527_p1 }
 0x1cd   : > { %667 = dma.done.wait (%p528_p3), %s406_s11, 128  }
 0x1ce   : > { %669 = vsyncadd (%p528_p3), %s406_s11, 4294967168  ;;  %s19_s17 = sadd.s32 1, %s692_s17   ;;  %s878_s12 = smov %s676_s13 }
 0x1cf   : > { %p16_p5 = scmp.ge.s32.totalorder %s19_s17, 4   ;;  %s879_s13 = smov %s680_s14 }
 0x1d0   : > { %s880_s14 = smov %s776_s26  ;;  %s881_s15 = smov %s688_s16 }
 0x1d1   : > { %s882_s16 = smov %s884_s20  ;;  %18 = sbr.rel (!%p16_p5) target bundleno = 6 (0x6), region = 80 }
 0x1d6   :  { %411 = vsyncpa [#allocation3], 1 }
 0x1d7   :  { %413 = vsyncpa [#allocation3 + $0x1], 1 }
 0x1d8   :  { %414 = vsyncpa [#allocation4], 1 }
 0x1d9   :  { %416 = vsyncpa [#allocation4 + $0x1], 1 }

</bundles_post_ra>
